<compile_context>
chip_gen: v7x
topology: tpu7x:2x2x1
jax: 0.10.0
libtpu: 0.0.40
codegen_flags: <defaults>
</compile_context>

<pallas_src>
import jax
import jax.numpy as jnp
from jax.experimental import pallas as pl
from jax.experimental.pallas import tpu as pltpu


def _se_kernel(x_ref, w1t_ref, b1_ref, w2t_ref, b2_ref, o_ref):
    # x_ref/o_ref: (bb, C, HW) in storage dtype (f32 or bf16)
    # w1t_ref: (C, Hmid) f32, b1_ref: (1, Hmid) f32
    # w2t_ref: (Hmid, C) f32, b2_ref: (1, C) f32

    # Global average pool over the flattened spatial (lane) dim -> (bb, C) f32.
    gap = jnp.mean(x_ref[...].astype(jnp.float32), axis=-1)

    # Tiny MLP: fc1 -> ReLU -> fc2 -> Sigmoid.  Negligible vs. HBM traffic.
    # TODO(synk): when hmid < ~32, a VPU broadcast-mul + lane reduction would
    # avoid padded MXU push/drain; only worth it if profiling shows it exposed.
    h = jnp.dot(gap, w1t_ref[...], preferred_element_type=jnp.float32) + b1_ref[...]
    h = jnp.maximum(h, 0.0)
    s = jnp.dot(h, w2t_ref[...], preferred_element_type=jnp.float32) + b2_ref[...]
    s = jax.nn.sigmoid(s)                      # (bb, C) f32

    # Channel-wise rescale: re-read x from VMEM and stream the broadcast
    # multiply straight to the output (x is not held in vregs across the MLP).
    # The multiply runs in the storage dtype (native bf16 on v6e/v7x; the
    # compiler widens on v5e which has no bf16 VALU).
    s_cast = s.astype(o_ref.dtype)
    o_ref[...] = x_ref[...] * s_cast[:, :, None]


def _vmem_capacity_bytes():
    """Physical VMEM per TensorCore; conservative fallback if query fails."""
    try:
        return int(pltpu.get_tpu_info().vmem_capacity_bytes)
    except Exception:
        return 64 * 1024 * 1024  # v7x per-TC (smallest of current generations)


def se_layer(feature, w1, b1, w2, b2, *, block_b=None, storage_dtype=None,
             input_buffers=2):
    """SELayer forward.

    feature: (B, C, H, W)
    w1: (C//r, C), b1: (C//r,)   -- fc1  (PyTorch Linear convention: (out, in))
    w2: (C, C//r), b2: (C,)      -- fc2
    storage_dtype: dtype used for the streamed feature map (f32 or bf16);
      bf16 halves HBM traffic on the bandwidth-bound rescale.  Defaults to
      feature.dtype.  The output is returned in this dtype.
    input_buffers: pipelining depth for the x blocks (default 2; use 3 on v7x
      if xprof shows input-DMA gaps at step boundaries).
    """
    B, C, H, W = feature.shape
    HW = H * W
    hmid = w1.shape[0]

    if storage_dtype is None:
        storage_dtype = feature.dtype
    storage_dtype = jnp.dtype(storage_dtype)
    itemsize = storage_dtype.itemsize

    # Lane-dense layout: flatten spatial dims so the lane dim is HW (free
    # reshape for contiguous NCHW).
    # TODO(synk): for real SE shapes with HW not a multiple of 128 but C a
    # multiple of 128 (e.g. 7x7 x 2048), a channels-last (B, HW, C) layout is
    # preferable *when the producer already emits NHWC*; a standalone
    # transpose here would cost a full extra HBM pass, so it is not inserted.
    # Note: C < 8 (f32) / 16 (bf16) pads the sublane dim of each (C, HW) slab;
    # fine for small demo shapes, avoid for production feature maps.
    x3 = feature.reshape(B, C, HW).astype(storage_dtype)

    # Weights/biases stay f32 regardless of the feature-map storage dtype.
    w1t = jnp.transpose(w1).astype(jnp.float32)      # (C, hmid)
    w2t = jnp.transpose(w2).astype(jnp.float32)      # (hmid, C)
    b1_2d = b1.reshape(1, hmid).astype(jnp.float32)
    b2_2d = b2.reshape(1, C).astype(jnp.float32)

    # ---- Generation-aware block sizing -------------------------------------
    vmem_cap = _vmem_capacity_bytes()
    vmem_limit_cap = vmem_cap * 3 // 4               # 96 MiB v5e/v6e, 48 MiB v7x
    n_bufs = int(input_buffers) + 2                  # pipelined x bufs + 2 o bufs
    per_row = C * HW * itemsize                      # one batch row of a block
    w_bytes = int((w1t.size + b1_2d.size + w2t.size + b2_2d.size) * 4)
    headroom = 2 << 20                               # compiler scratch / sems

    # Largest bb whose pipelined buffers + weights + headroom fit under the cap.
    max_bb_fit = (vmem_limit_cap - 4 * w_bytes - headroom) // (n_bufs * per_row)
    if max_bb_fit < 1:
        # TODO(synk): two-pass fallback (GAP+MLP kernel producing s, then a
        # rescale kernel tiled over C/HW) for feature maps whose single batch
        # row exceeds the VMEM budget (e.g. C=256, HW=224*224).
        raise ValueError(
            f"SELayer pallas kernel: one batch row needs {per_row} bytes; "
            f"{n_bufs} pipelined buffers do not fit the {vmem_limit_cap}-byte "
            f"VMEM budget. Reduce C*H*W or use bf16 storage_dtype.")

    if block_b is None:
        # Target ~5/8 of physical VMEM for the pipelined x/o buffers:
        # block ~20 MiB on v5e/v6e (128 MiB VMEM), ~10 MiB on v7x (64 MiB).
        budget_per_buf = (vmem_cap * 5 // 8) // n_bufs
        bb = max(1, budget_per_buf // per_row)
    else:
        bb = max(1, int(block_b))
    bb = min(bb, int(max_bb_fit), B)                 # shrink bb, never the limit
    if B >= 2:
        # >= 2 grid steps: shards across v7x's two TensorCores and keeps
        # DMA/compute pipelining active.
        bb = min(bb, pl.cdiv(B, 2))
    if bb >= 8:
        bb = (bb // 8) * 8                           # sublane-aligned M for the FCs
    bb = int(max(1, bb))

    grid = (pl.cdiv(B, bb),)
    # When B % bb != 0 the padded tail rows run sigmoid on stale VMEM data;
    # those writes are discarded so the result is still correct.

    block_bytes = bb * per_row
    vmem_limit = int(min(max(n_bufs * block_bytes + 4 * w_bytes + headroom,
                             8 << 20),
                         vmem_limit_cap))

    cost = pl.CostEstimate(
        flops=2 * B * C * HW + 4 * B * C * hmid,     # GAP + rescale + tiny MLP
        transcendentals=B * C,                        # sigmoid
        bytes_accessed=2 * B * C * HW * itemsize + w_bytes,
    )

    x_spec_kwargs = {}
    if int(input_buffers) != 2:
        # Deeper input pipelining (v7x: hides DMA behind the short ~2 us steps).
        x_spec_kwargs["pipeline_mode"] = pl.Buffered(int(input_buffers))

    out3 = pl.pallas_call(
        _se_kernel,
        out_shape=jax.ShapeDtypeStruct((B, C, HW), storage_dtype),
        grid=grid,
        in_specs=[
            pl.BlockSpec((bb, C, HW), lambda i: (i, 0, 0), **x_spec_kwargs),
            pl.BlockSpec((C, hmid), lambda i: (0, 0)),
            pl.BlockSpec((1, hmid), lambda i: (0, 0)),
            pl.BlockSpec((hmid, C), lambda i: (0, 0)),
            pl.BlockSpec((1, C), lambda i: (0, 0)),
        ],
        out_specs=pl.BlockSpec((bb, C, HW), lambda i: (i, 0, 0)),
        compiler_params=pltpu.CompilerParams(
            dimension_semantics=("parallel",),
            vmem_limit_bytes=vmem_limit,
        ),
        cost_estimate=cost,
    )(x3, w1t, b1_2d, w2t, b2_2d)

    return out3.reshape(B, C, H, W)


if __name__ == "__main__":
    # Small shapes consistent with the module: SELayer(channel_num=4, compress_rate=2)
    B, C, H, W = 2, 4, 16, 16
    compress_rate = 2
    hmid = C // compress_rate

    key = jax.random.PRNGKey(0)
    k_x, k_w1, k_b1, k_w2, k_b2 = jax.random.split(key, 5)

    x = jax.random.normal(k_x, (B, C, H, W), dtype=jnp.float32)
    # Deterministic synthetic parameters (shapes from nn.Linear in __init__)
    w1 = jax.random.normal(k_w1, (hmid, C), dtype=jnp.float32) * 0.1
    b1 = jax.random.normal(k_b1, (hmid,), dtype=jnp.float32) * 0.1
    w2 = jax.random.normal(k_w2, (C, hmid), dtype=jnp.float32) * 0.1
    b2 = jax.random.normal(k_b2, (C,), dtype=jnp.float32) * 0.1

    # Pure-JAX reference (same semantics as the PyTorch forward).
    gap = jnp.mean(x, axis=(2, 3))
    h = jnp.maximum(gap @ w1.T + b1, 0.0)
    s = jax.nn.sigmoid(h @ w2.T + b2)
    ref = x * s[:, :, None, None]

    # f32 path (exact module semantics).
    out = se_layer(x, w1, b1, w2, b2)
    jax.block_until_ready(out)
    assert out.dtype == jnp.float32
    assert jnp.allclose(out, ref, atol=1e-5, rtol=1e-5), "f32 mismatch vs reference"

    # bf16 storage path (half the HBM traffic); loose tolerance for bf16 rounding.
    out_bf16 = se_layer(x, w1, b1, w2, b2, storage_dtype=jnp.bfloat16)
    jax.block_until_ready(out_bf16)
    assert out_bf16.dtype == jnp.bfloat16
    assert jnp.allclose(out_bf16.astype(jnp.float32), ref, atol=5e-2, rtol=5e-2), \
        "bf16 mismatch vs reference"

    print("KERNEL_OK")
</pallas_src>

<mosaic_0001>
module attributes {stable_mosaic.version = 11 : i64} {
  func.func @_se_kernel(%arg0: i32, %arg1: memref<1x4x256xf32, #tpu.memory_space<vmem>>, %arg2: memref<4x2xf32, #tpu.memory_space<vmem>>, %arg3: memref<1x2xf32, #tpu.memory_space<vmem>>, %arg4: memref<2x4xf32, #tpu.memory_space<vmem>>, %arg5: memref<1x4xf32, #tpu.memory_space<vmem>>, %arg6: memref<1x4x256xf32, #tpu.memory_space<vmem>>) attributes {dimension_semantics = [#tpu.dimension_semantics<parallel>], iteration_bounds = array<i64: 2>, scalar_prefetch = 0 : i64, scratch_operands = 0 : i64, tpu.core_type = #tpu.core_type<tc>, window_params = [{transform_indices = @transform_0, window_bounds = array<i64: 1, 4, 256>}, {pipeline_mode = #tpu.pipeline_mode<synchronous>, transform_indices = @transform_1, window_bounds = array<i64: 4, 2>}, {pipeline_mode = #tpu.pipeline_mode<synchronous>, transform_indices = @transform_2, window_bounds = array<i64: 1, 2>}, {pipeline_mode = #tpu.pipeline_mode<synchronous>, transform_indices = @transform_3, window_bounds = array<i64: 2, 4>}, {pipeline_mode = #tpu.pipeline_mode<synchronous>, transform_indices = @transform_4, window_bounds = array<i64: 1, 4>}, {transform_indices = @transform_5, window_bounds = array<i64: 1, 4, 256>}]} {
    %c0 = arith.constant 0 : index
    %c0_0 = arith.constant 0 : index
    %c0_1 = arith.constant 0 : index
    %0 = vector.load %arg1[%c0, %c0_0, %c0_1] : memref<1x4x256xf32, #tpu.memory_space<vmem>>, vector<1x4x256xf32>
    %cst = arith.constant dense<0.000000e+00> : vector<1x4xf32>
    %1 = vector.multi_reduction <add>, %0, %cst [2] : vector<1x4x256xf32> to vector<1x4xf32>
    %cst_2 = arith.constant 2.560000e+02 : f32
    %2 = vector.broadcast %cst_2 : f32 to vector<1x4xf32>
    %3 = arith.divf %1, %2 : vector<1x4xf32>
    %c0_3 = arith.constant 0 : index
    %c0_4 = arith.constant 0 : index
    %4 = vector.load %arg2[%c0_3, %c0_4] : memref<4x2xf32, #tpu.memory_space<vmem>>, vector<4x2xf32>
    %cst_5 = arith.constant dense<0.000000e+00> : vector<1x2xf32>
    %5 = tpu.matmul %3, %4, %cst_5 {dimension_numbers = #tpu.dot_dimension_numbers<[1], [0], [0], [1], [0, 0, 1, 1], [], []>} : vector<1x4xf32>, vector<4x2xf32>, vector<1x2xf32> -> vector<1x2xf32>
    %c0_6 = arith.constant 0 : index
    %c0_7 = arith.constant 0 : index
    %6 = vector.load %arg3[%c0_6, %c0_7] : memref<1x2xf32, #tpu.memory_space<vmem>>, vector<1x2xf32>
    %7 = arith.addf %5, %6 : vector<1x2xf32>
    %cst_8 = arith.constant 0.000000e+00 : f32
    %8 = vector.broadcast %cst_8 : f32 to vector<1x2xf32>
    %9 = arith.maximumf %7, %8 : vector<1x2xf32>
    %c0_9 = arith.constant 0 : index
    %c0_10 = arith.constant 0 : index
    %10 = vector.load %arg4[%c0_9, %c0_10] : memref<2x4xf32, #tpu.memory_space<vmem>>, vector<2x4xf32>
    %cst_11 = arith.constant dense<0.000000e+00> : vector<1x4xf32>
    %11 = tpu.matmul %9, %10, %cst_11 {dimension_numbers = #tpu.dot_dimension_numbers<[1], [0], [0], [1], [0, 0, 1, 1], [], []>} : vector<1x2xf32>, vector<2x4xf32>, vector<1x4xf32> -> vector<1x4xf32>
    %c0_12 = arith.constant 0 : index
    %c0_13 = arith.constant 0 : index
    %12 = vector.load %arg5[%c0_12, %c0_13] : memref<1x4xf32, #tpu.memory_space<vmem>>, vector<1x4xf32>
    %13 = arith.addf %11, %12 : vector<1x4xf32>
    %14 = arith.negf %13 : vector<1x4xf32>
    %15 = math.exp %14 : vector<1x4xf32>
    %cst_14 = arith.constant 1.000000e+00 : f32
    %16 = vector.broadcast %cst_14 : f32 to vector<1x4xf32>
    %17 = arith.addf %16, %15 : vector<1x4xf32>
    %18 = arith.divf %16, %17 : vector<1x4xf32>
    %c0_15 = arith.constant 0 : index
    %c0_16 = arith.constant 0 : index
    %c0_17 = arith.constant 0 : index
    %19 = vector.load %arg1[%c0_15, %c0_16, %c0_17] : memref<1x4x256xf32, #tpu.memory_space<vmem>>, vector<1x4x256xf32>
    %20 = vector.shape_cast %18 : vector<1x4xf32> to vector<1x4x1xf32>
    %21 = vector.broadcast %20 : vector<1x4x1xf32> to vector<1x4x256xf32>
    %22 = arith.mulf %19, %21 : vector<1x4x256xf32>
    %c0_18 = arith.constant 0 : index
    %c0_19 = arith.constant 0 : index
    %c0_20 = arith.constant 0 : index
    %23 = vector.load %arg6[%c0_18, %c0_19, %c0_20] : memref<1x4x256xf32, #tpu.memory_space<vmem>>, vector<1x4x256xf32>
    tpu.vector_store %arg6[%c0_18, %c0_19, %c0_20], %22 {strides = array<i32>} : memref<1x4x256xf32, #tpu.memory_space<vmem>>, vector<1x4x256xf32>,
    return
  }
  func.func @transform_0(%arg0: i32) -> (i32, i32, i32) {
    %c0_i32 = arith.constant 0 : i32
    %c0_i32_0 = arith.constant 0 : i32
    %c0_i32_1 = arith.constant 0 : i32
    return %arg0, %c0_i32, %c0_i32_0 : i32, i32, i32
  }
  func.func @transform_1(%arg0: i32) -> (i32, i32) {
    %c0_i32 = arith.constant 0 : i32
    %c0_i32_0 = arith.constant 0 : i32
    %c0_i32_1 = arith.constant 0 : i32
    return %c0_i32, %c0_i32_0 : i32, i32
  }
  func.func @transform_2(%arg0: i32) -> (i32, i32) {
    %c0_i32 = arith.constant 0 : i32
    %c0_i32_0 = arith.constant 0 : i32
    %c0_i32_1 = arith.constant 0 : i32
    return %c0_i32, %c0_i32_0 : i32, i32
  }
  func.func @transform_3(%arg0: i32) -> (i32, i32) {
    %c0_i32 = arith.constant 0 : i32
    %c0_i32_0 = arith.constant 0 : i32
    %c0_i32_1 = arith.constant 0 : i32
    return %c0_i32, %c0_i32_0 : i32, i32
  }
  func.func @transform_4(%arg0: i32) -> (i32, i32) {
    %c0_i32 = arith.constant 0 : i32
    %c0_i32_0 = arith.constant 0 : i32
    %c0_i32_1 = arith.constant 0 : i32
    return %c0_i32, %c0_i32_0 : i32, i32
  }
  func.func @transform_5(%arg0: i32) -> (i32, i32, i32) {
    %c0_i32 = arith.constant 0 : i32
    %c0_i32_0 = arith.constant 0 : i32
    %c0_i32_1 = arith.constant 0 : i32
    return %arg0, %c0_i32, %c0_i32_0 : i32, i32, i32
  }
}

</mosaic_0001>

<bundles_post_ra>
// kernel: tpu_custom_call.1
= control target key start
LH: loop header
LB: loop body
LE: loop exit
PB: predicated region body
PF: predicated region fallthrough
CT: control target
= control target key end

     0   :  { %10 = vsyncpa [#allocation3], 0  ;;  %s927_s0 = inlined_call_operand.hbm [shape: f32[2,4,256], index: 0, kind: input, shape index: {}]   ;;  %s928_s1 = inlined_call_operand.vmem [shape: f32[4,2], index: 1, kind: input, shape index: {}]   ;;  %s929_s2 = inlined_call_operand.vmem [shape: f32[1,2], index: 2, kind: input, shape index: {}]   ;;  %s930_s3 = inlined_call_operand.vmem [shape: f32[2,4], index: 3, kind: input, shape index: {}]   ;;  %s931_s4 = inlined_call_operand.vmem [shape: f32[1,4], index: 4, kind: input, shape index: {}]   ;;  %s932_s5 = inlined_call_operand.hbm [shape: f32[2,4,256], index: 5, kind: output, shape index: {}]  }
   0x1   :  { %12 = vsyncpa [#allocation3 + $0x1], 0 }
   0x2   :  { %13 = vsyncpa [#allocation4], 0 }
   0x3   :  { %15 = vsyncpa [#allocation4 + $0x1], 0  ;;  %s750_s18 = smov 0   ;;  %s752_s19 = smov 0  }
   0x4   :  { %s754_s20 = smov 0   ;;  %s756_s21 = smov 0  }
   0x5 LB: > { %s771_s22 = sadd.s32 4294967295, %s713_s21   ;;  %s528_s23 = sadd.s32 4294967294, %s713_s21   ;;  %s713_s21 = sphi %s756_s21, %s947_s21   ;;  %s709_s20 = sphi %s754_s20, %s946_s20   ;;  %s705_s19 = sphi %s752_s19, %s945_s19   ;;  %s701_s18 = sphi %s750_s18, %s944_s18  }
   0x6   : > { %s775_s24 = sadd.s32 1, %s713_s21   ;;  %s28_s25 = sadd.s32 1, %s709_s20 }
   0x7   : > { %s25_s26 = ssub.s32 %s713_s21, %s775_s24  ;;  %p35_p0 = scmp.ne.s32.totalorder %s709_s20, %s705_s19 }
   0x8   : > { %p26_p1 = scmp.eq.s32.totalorder %s25_s26, 0  ;;  %p36_p2 = scmp.eq.s32.totalorder %s713_s21, 0 }
   0x9   : > { %p41_p3 = scmp.ne.s32.totalorder %s705_s19, %s701_s18  ;;  %p42_p4 = scmp.eq.s32.totalorder %s771_s22, 0 }
   0xa   : > { %s787_s27 = scalar_select %p26_p1, %s709_s20, %s28_s25  }
   0xb   : > { %p789_p5 = por %p36_p2, %p35_p0  ;;  %p793_p6 = por %p42_p4, %p41_p3 }
   0xc   : > { %p149_p7 = scmp.eq.s32.totalorder %s771_s22, 1  ;;  %p155_p8 = scmp.eq.s32.totalorder %s528_s23, 1 }
   0xd   : > { %p575_p10 = scmp.lt.s32.totalorder %s713_s21, 2  ;;  %s187_s7 = sand.u32 1, %s709_s20  }
   0xe   : > { %p800_p11 = por %p149_p7, %p35_p0  ;;  %p804_p12 = por %p155_p8, %p41_p3 }
   0xf   : > { %s547_s8 = sshll.u32 %s713_s21, 7  ;;  %s531_s9 = sshll.u32 %s187_s7, 3 }
  0x10   : > { %s936_s30 = scalar_select %p800_p11, 1, 0 }
  0x11   : > { %s937_s6 = scalar_select %p804_p12, 1, 0 }
  0x12   : > { %s813_s12 = scalar_lea.hbm %s927_s0, %s547_s8  ;;  %s191_s13 = scalar_lea.vmem [#allocation2], %s531_s9 }
  0x13   : > { %s199_s14 = sshll.u32 %s191_s13, 4  ;;  %p817_p13 = pnand %p575_p10, %p789_p5  ;;  %s821_s14 = int_to_ptr.vmem [resolvable:$true] %s199_s14 }
  0x14   : > { %s188_s16 = scalar_lea.sflag [#allocation3], %s187_s7  ;;  %s617_s17 = scalar_lea.hbm %s813_s12, 128 }
  0x15   : > { %p618_p2 = scmp.ne.s32.totalorder %s813_s12, %s617_s17  ;;  %p619_p3 = pneg %p817_p13 }
  0x16   : > { %s622_s26 = scalar_lea.hbm %s927_s0, 256  ;;  %p623_p5 = scmp.lt.u32.totalorder %s813_s12, %s927_s0 }
  0x17   : > { %p620_p4 = pnand %p619_p3, %p618_p2  ;;  %p624_p8 = scmp.lt.u32.totalorder %s622_s26, %s617_s17 }
  0x18   : > { %p626_p9 = scmp.lt.u32.totalorder %s617_s17, %s813_s12 }
  0x19   : > { %p621_p7 = pneg %p620_p4  ;;  %p625_p10 = por %p624_p8, %p623_p5 }
  0x1b   : > { %p627_p0 = por %p626_p9, %p625_p10 }
  0x1d   : > { %p628_p1 = pnand %p627_p0, %p621_p7 }
  0x1f   : > { %631 = shalt.err (!%p628_p1)
}
  0x20   : > { %s632_s7 = scalar_lea.vmem %s821_s14, 128  ;;  %s715_s9 = smov [#allocation2]  }
  0x21   : > { %p633_p2 = scmp.ne.s32.totalorder %s821_s14, %s632_s7  ;;  %s637_s10 = sshll.u32 %s715_s9, 4  ;;  %s638_s10 = int_to_ptr.vmem [resolvable:$false] %s637_s10 }
  0x22   : > { %s639_s11 = scalar_lea.vmem %s638_s10, 256  ;;  %p640_p11 = scmp.lt.s32.totalorder %s821_s14, %s638_s10 }
  0x23   : > { %p635_p4 = pnand %p633_p2, %p619_p3  ;;  %p641_p5 = scmp.lt.s32.totalorder %s639_s11, %s632_s7 }
  0x25   : > { %p636_p12 = pneg %p635_p4  ;;  %p642_p8 = por %p641_p5, %p640_p11 }
  0x27   : > { %p643_p9 = pnand %p642_p8, %p636_p12 }
  0x29   : > { %646 = shalt.err (!%p643_p9)
}
  0x2a   : > { %570 = dma.hbm_to_vmem [thread:$0]  (!%p817_p13), %s813_s12, 128, %s821_s14, %s188_s16  }
  0x2b   : > { %p939_p0 = scmp.lt.s32.totalorder %s713_s21, 3  ;;  %p940_p1 = scmp.ge.s32.totalorder %s713_s21, 1 }
  0x2d   : > { %p205_p3 = pnand %p940_p1, %p939_p0 }
  0x2e   : > { %s855_s13 = sand.u32 (!%p205_p3), 1, %s705_s19  }
  0x2f   : > { %208 = sbr.rel (%p205_p3) target bundleno = 798 (0x31e), region = 40  ;;  %s535_s17 = sshll.u32 (!%p205_p3), %s855_s13, 3 }
  0x30   : > { %s211_s23 = scalar_lea.sflag (!%p205_p3), [#allocation3], %s855_s13  ;;  %s214_s15 = scalar_lea.vmem (!%p205_p3), [#allocation2], %s535_s17 }
  0x36   : > { %692 = dma.done.wait (%p793_p6), %s211_s23, 128  }
  0x37   : > { %694 = vsyncadd (%p793_p6), %s211_s23, 4294967168  ;;  %vm245_vm0 = vcmask 1043456   ;;  %v241_v0 = vld [vmem:[%s214_s15] sm:$0xff]  ;;  %v716_v5 = vmov 0.0   ;;  %vm717_vm1 = vmmov 0   ;;  %v256_v7 = vlaneseq  ;;  %s548_s7 = sshll.u32 %s771_s22, 7 }
  0x38   : > { %v243_v1 = vcombine.high %v241_v0, %v241_v0  ;;  %v246_v2 = vsel %vm245_vm0, %v241_v0, 0.0  ;;  %553 = vmatprep.subr.mxu0 %v716_v5  ;;  %v253_v6 = vld [vmem:[%s928_s1] sm:$0xf]  ;;  %558 = vmatprep.subr.mxu1 %v716_v5  ;;  %vm262_vm2 = vcmask 31744   ;;  %vm345_vm3 = vcmask 1041408   ;;  %s240_s9 = scalar_lea.vmem [#allocation5], %s535_s17  ;;  %s883_s15 = scalar_lea.hbm %s932_s5, %s548_s7 }
  0x39   : > { %554 = vmatpush3.msk.msra.mxu0 %vm245_vm0, %v253_v6  ;;  %555 = vmatprep.mubr.msk.f32.mxu0 %vm717_vm1, %v716_v5  ;;  %v257_v8 = vand.u32 127, %v256_v7  ;;  %v259_v9 = vshrl.u32 %v256_v7, 7  ;;  %v339_v14 = vld [vmem:[%s930_s3] sm:$0x3]  ;;  %vm341_vm4 = vcmask 15360   ;;  %s458_s10 = sshll.u32 %s240_s9, 4  ;;  %s885_s10 = int_to_ptr.vmem [resolvable:$true] %s458_s10 }
  0x3a   : > { %v247_v3 = vsel %vm245_vm0, %v243_v1, 0.0  ;;  %560 = vmatprep.mubr.msk.f32.mxu1 %vm717_vm1, %v716_v5  ;;  %559 = vmatpush3.msk.msra.mxu1 %vm345_vm3, %v339_v14  ;;  %v254_v15 = vld [vmem:[%s929_s2] sm:$0x1]  ;;  %v718_v30 = vmov 839922192   ;;  %s444_s12 = scalar_lea.sflag [#allocation4], %s855_s13 }
  0x3b   : > { %v248_v4 = vadd.f32 %v247_v3, %v246_v2  ;;  %v260_v10 = vsub.s32 %v257_v8, %v259_v9  ;;  %v340_v20 = vld [vmem:[%s931_s4] sm:$0x1]  ;;  %v427_v27 = vsub.s32 0, %v259_v9  ;;  %v434_v31 = vunpack.c.l.s4 %v718_v30  ;;  %s647_s14 = scalar_lea.vmem %s885_s10, 128  ;;  %p941_p11 = scmp.ne.s32.totalorder %s936_s30, 0 }
  0x3c   : > { %p648_p6 = scmp.ne.s32.totalorder %s885_s10, %s647_s14  ;;  %s719_s22 = smov [#allocation5]  }
  0x3d   : > { %249 = vadd.xlane.f32.xlu0 %v248_v4  ;;  %v435_v32 = vunpack.c.0.s8 %v434_v31  ;;  %s651_s17 = sshll.u32 %s719_s22, 4  ;;  %s652_s17 = int_to_ptr.vmem [resolvable:$false] %s651_s17 }
  0x3e   : > { %p649_p12 = pnand %p648_p6, %p941_p11  ;;  %s653_s29 = scalar_lea.vmem %s652_s17, 256 }
  0x3f   : > { %v438_v33 = vsub.s32 %v435_v32, %v259_v9  ;;  %p654_p7 = scmp.lt.s32.totalorder %s885_s10, %s652_s17  ;;  %p655_p10 = scmp.lt.s32.totalorder %s653_s29, %s647_s14 }
  0x40   : > { %p650_p13 = pneg %p649_p12 }
  0x41   : > { %p656_p2 = por %p655_p10, %p654_p7 }
  0x43   : > { %p657_p4 = pnand %p656_p2, %p650_p13 }
  0xca   : > { %v250_v11 = vpop.xlane.xlu0 %249 }
  0xcb   : > { %v252_v12 = vmul.f32 0.00390625, %v250_v11 }
  0xcd   : > { %v261_v13 = vrot.slane %v252_v12, %v260_v10 }
  0xcf   : > { %556 = vmatmul.mubr.msk.f32.vlgmr.msra.gmra.mrb[0].mxu0 %vm262_vm2, %v261_v13 }
 0x1a2   : > { %v334_v16 = vpop.f32.mrb[0].mxu0 }
 0x1a3   : > { %v335_v17 = vadd.f32 %v334_v16, %v254_v15  ;;  %v557_v18 = vpop.f32.mrb[1].mxu0 }
 0x1a5   : > { %v338_v19 = vmax.f32 %v335_v17, 0.0 }
 0x1a7   : > { %561 = vmatmul.mubr.msk.f32.vlgmr.msra.gmra.mrb[0].mxu1 %vm341_vm4, %v338_v19 }
 0x27a   : > { %v415_v21 = vpop.f32.mrb[0].mxu1 }
 0x27b   : > { %v416_v22 = vadd.f32 %v415_v21, %v340_v20  ;;  %v562_v23 = vpop.f32.mrb[1].mxu1 }
 0x27d   : > { %v541_v24 = vmul.f32 -1.442695, %v416_v22 }
 0x27f   : > { %613 = vpow2.f32 %v541_v24 }
 0x289   : > { %v614_v25 = vpop.eup %613 }
 0x28a   : > { %v422_v26 = vadd.f32 1.0, %v614_v25 }
 0x28c   : > { %615 = vrcp.f32 %v422_v26 }
 0x296   : > { %v616_v28 = vpop.eup %615 }
 0x297   : > { %v428_v29 = vrot.slane %v616_v28, %v427_v27 }
 0x299   : > { %430 = vbcast.lane.b32.xlu0 %v428_v29, 256 }
 0x30b   : > { %v431_v34 = vpop.permute.xlu0 %430 }
 0x30c   : > { %v439_v35 = vrot.slane %v431_v34, %v438_v33 }
 0x30e   : > { %v441_v36 = vmul.f32 %v439_v35, %v241_v0 }
 0x310   : > { %442 = vst [vmem:[%s240_s9] sm:$0xff] %v441_v36 }
 0x311   : > { %660 = shalt.err (!%p657_p4)
}
 0x312   : > { %s661_s13 = scalar_lea.hbm %s883_s15, 128  ;;  %s665_s26 = scalar_lea.hbm %s932_s5, 256 }
 0x313   : > { %p662_p5 = scmp.ne.s32.totalorder %s883_s15, %s661_s13  ;;  %p666_p0 = scmp.lt.u32.totalorder %s883_s15, %s932_s5 }
 0x314   : > { %p667_p1 = scmp.lt.u32.totalorder %s665_s26, %s661_s13  ;;  %p669_p6 = scmp.lt.u32.totalorder %s661_s13, %s883_s15 }
 0x315   : > { %p663_p8 = pnand %p662_p5, %p941_p11 }
 0x316   : > { %p668_p3 = por %p667_p1, %p666_p0 }
 0x317   : > { %p664_p9 = pneg %p663_p8 }
 0x318   : > { %p670_p12 = por %p669_p6, %p668_p3 }
 0x31a   : > { %p671_p13 = pnand %p670_p12, %p664_p9 }
 0x31c   : > { %674 = shalt.err (!%p671_p13)
}
 0x31d   : > { %565 = dma.vmem_to_hbm [thread:$0]  (%p941_p11), %s885_s10, 128, %s883_s15, %s444_s12  }
 0x31e PF: > { %s470_s7 = sand.u32 1, %s701_s18   ;;  %p942_p7 = scmp.ne.s32.totalorder %s937_s6, 0 }
 0x31f   : > { %p943_p10 = scmp.ge.s32.totalorder %s713_s21, 2  ;;  %s471_s9 = scalar_lea.sflag [#allocation4], %s470_s7 }
 0x321   : > { %p572_p2 = pnand %p943_p10, %p942_p7 }
 0x323   : > { %696 = dma.done.wait (!%p572_p2), %s471_s9, 128  }
 0x324   : > { %698 = vsyncadd (!%p572_p2), %s471_s9, 4294967168  ;;  %p18_p4 = scmp.ge.s32.totalorder %s775_s24, 4   ;;  %s944_s18 = smov %s705_s19 }
 0x325   : > { %s945_s19 = smov %s709_s20  ;;  %s946_s20 = smov %s787_s27 }
 0x326   : > { %s947_s21 = smov %s775_s24  ;;  %20 = sbr.rel (!%p18_p4) target bundleno = 5 (0x5), region = 85 }
 0x32d   :  { %476 = vsyncpa [#allocation3], 1 }
 0x32e   :  { %478 = vsyncpa [#allocation3 + $0x1], 1 }
 0x32f   :  { %479 = vsyncpa [#allocation4], 1 }
 0x330   :  { %481 = vsyncpa [#allocation4 + $0x1], 1 }

</bundles_post_ra>
